<compile_context>
chip_gen: v5e
topology: v5e:2x2
jax: 0.10.0
libtpu: 0.0.40
codegen_flags: <defaults>
</compile_context>

<pallas_src>
import functools

import jax
import jax.numpy as jnp
from jax import lax
from jax.experimental import pallas as pl
from jax.experimental.pallas import tpu as pltpu

_EPS = 1e-3


@functools.lru_cache(maxsize=1)
def _vmem_limit_bytes():
    """Per-generation scoped-VMEM budget (~75% of physical VMEM)."""
    cap = 0
    try:
        cap = int(getattr(pltpu.get_tpu_info(), "vmem_capacity_bytes", 0) or 0)
    except Exception:
        cap = 0
    if cap <= 0:
        cap = 64 * 1024 * 1024  # conservative: v7x physical VMEM
    return (cap * 3) // 4


def _largest_divisor_leq(n, cap):
    cap = max(1, min(n, cap))
    for d in range(cap, 0, -1):
        if n % d == 0:
            return d
    return 1


def _pick_l_tile(l_out, c_out, b_tile, budget_bytes):
    """Largest lane tile (multiple of 128 dividing l_out) whose double-buffered
    in+out blocks fit the budget; else fall back to the full (legal) dimension."""
    for t in (8192, 4096, 2048, 1024, 512, 256, 128):
        if l_out % t == 0 and 4 * b_tile * c_out * t * 4 <= budget_bytes:
            return t
    return l_out


def _conv_rows(x_ref, w_ref, K, padding, L_out):
    """Cast + zero-pad the x block in VMEM, then yield per-row conv results.

    x_ref: (B_TILE, C_in, L) f32 block, w_ref: (C_out, K*C_in) bf16 resident.
    Yields (i, (C_out, L_out) f32) — one fused MXU contraction per batch row
    (K folded into the contraction dimension; f32 accumulation).
    """
    x = x_ref[...].astype(jnp.bfloat16)                     # HBM reads stay f32
    if padding > 0:
        zpad = jnp.zeros(x.shape[:2] + (padding,), jnp.bfloat16)
        x = jnp.concatenate([zpad, x, zpad], axis=2)        # (B_TILE, C_in, L_pad)
    w = w_ref[...]                                          # (C_out, K*C_in)
    for i in range(x.shape[0]):                             # static unroll, small
        rhs = jnp.concatenate([x[i, :, k:k + L_out] for k in range(K)], axis=0)
        yield i, jnp.dot(w, rhs, preferred_element_type=jnp.float32)


def _conv_bn_relu_fused_kernel(x_ref, w_ref, gamma_ref, beta_ref, out_ref,
                               *, K, padding, inv_count, eps):
    """Fused single pass: conv into a VMEM-resident output, BN+ReLU in place.

    out_ref: (N, C_out, L_out) f32, constant-index block -> resident across the
    whole grid, written back to HBM exactly once.  Grid axis must be 'arbitrary'.
    """
    B_TILE = x_ref.shape[0]
    L_out = out_ref.shape[2]
    n0 = pl.program_id(0) * B_TILE

    for i, acc in _conv_rows(x_ref, w_ref, K, padding, L_out):
        out_ref[n0 + i] = acc

    @pl.when(pl.program_id(0) == pl.num_programs(0) - 1)
    def _finalize():
        n_rows = out_ref.shape[0]
        zeros = jnp.zeros((out_ref.shape[1], 1), jnp.float32)

        # Mean-subtracted two-pass stats over the VMEM-resident output (no
        # E[x^2]-E[x]^2 cancellation); streamed row-by-row to bound live vregs.
        def _sum_body(n, s):
            return s + jnp.sum(out_ref[n], axis=1, keepdims=True)
        mean = lax.fori_loop(0, n_rows, _sum_body, zeros) * inv_count

        def _var_body(n, v):
            d = out_ref[n] - mean
            return v + jnp.sum(d * d, axis=1, keepdims=True)
        var = lax.fori_loop(0, n_rows, _var_body, zeros) * inv_count

        inv = gamma_ref[...] * lax.rsqrt(var + eps)          # (C_out, 1)
        shift = beta_ref[...] - mean * inv

        @pl.loop(0, n_rows)
        def _apply(n):
            out_ref[n] = jnp.maximum(out_ref[n] * inv + shift, 0.0)


def _conv_partial_stats_kernel(x_ref, w_ref, y_ref, psum_ref, psumsq_ref,
                               *, K, padding):
    """Two-pass fallback, pass 1: conv for B_TILE rows + per-block partial stats.

    Each grid step writes its OWN (1, C_out, 1) stat block, so the batch axis is
    'parallel' (megacore-shardable on v7x) and stats stay correct.
    """
    L_out = y_ref.shape[2]
    s = jnp.zeros(psum_ref.shape, jnp.float32)
    ss = jnp.zeros(psumsq_ref.shape, jnp.float32)
    for i, acc in _conv_rows(x_ref, w_ref, K, padding, L_out):
        y_ref[i] = acc
        s += jnp.sum(acc, axis=1, keepdims=True)[None]
        ss += jnp.sum(acc * acc, axis=1, keepdims=True)[None]
    psum_ref[...] = s
    psumsq_ref[...] = ss


def _bn_relu_kernel(y_ref, inv_ref, shift_ref, o_ref):
    """Two-pass fallback, pass 2: fused scale/shift BatchNorm + ReLU (NCL tiles)."""
    o = y_ref[...] * inv_ref[...][None] + shift_ref[...][None]
    o_ref[...] = jnp.maximum(o, 0.0).astype(o_ref.dtype)


@functools.partial(jax.jit, static_argnames=("stride", "padding", "force_two_pass"))
def conv1d_bn_relu(x, weight, gamma, beta, *, stride=1, padding=0,
                   force_two_pass=False):
    """ReLU(BatchNorm1d_train(Conv1d(x, weight, bias=None))) for NCL input.

    x: (N, C_in, L) f32; weight: (C_out, C_in, K) (PyTorch layout);
    gamma/beta: (C_out,).  Returns (N, C_out, L_out) f32.
    """
    N, C_in, L = x.shape
    C_out, _, K = weight.shape
    if stride != 1:
        # TODO(synk): general stride needs a strided lane slice in-kernel; only
        # the instantiated stride=1 configuration is implemented.
        raise NotImplementedError("Pallas Conv1d kernel currently supports stride=1")
    L_out = L + 2 * padding - K + 1

    x = x.astype(jnp.float32)
    # Weight folded for a single contraction: row r = k*C_in + c  <->  w[:, c, k].
    w_mat = jnp.transpose(weight, (0, 2, 1)).reshape(C_out, K * C_in).astype(jnp.bfloat16)
    gamma2 = gamma.reshape(C_out, 1).astype(jnp.float32)
    beta2 = beta.reshape(C_out, 1).astype(jnp.float32)

    vmem_limit = _vmem_limit_bytes()

    # Batch tile: amortize per-grid-step overhead, bounded by VMEM and unroll size.
    per_batch_bytes = 4 * (C_in * L + 2 * C_out * L_out)
    b_cap = max(1, (vmem_limit // 8) // max(per_batch_bytes, 1))
    B_TILE = _largest_divisor_leq(N, min(b_cap, 32))
    n_blocks = N // B_TILE

    out_bytes = N * C_out * L_out * 4
    x_block_bytes = B_TILE * C_in * L * 4
    # Fused path needs the whole conv output resident in VMEM (gate on size).
    fused_ok = (2 * out_bytes + 2 * x_block_bytes + (2 << 20)) <= (vmem_limit * 3) // 5

    make_params = functools.partial(pltpu.CompilerParams, vmem_limit_bytes=vmem_limit)

    if fused_ok and not force_two_pass:
        # ---- Single fused pass: no f32 intermediate HBM round trip, one launch.
        kernel = functools.partial(
            _conv_bn_relu_fused_kernel, K=K, padding=padding,
            inv_count=1.0 / float(N * L_out), eps=_EPS)
        return pl.pallas_call(
            kernel,
            grid=(n_blocks,),
            in_specs=[
                pl.BlockSpec((B_TILE, C_in, L), lambda n: (n, 0, 0)),
                pl.BlockSpec((C_out, K * C_in), lambda n: (0, 0)),
                pl.BlockSpec((C_out, 1), lambda n: (0, 0)),
                pl.BlockSpec((C_out, 1), lambda n: (0, 0)),
            ],
            out_specs=pl.BlockSpec((N, C_out, L_out), lambda n: (0, 0, 0)),
            out_shape=jax.ShapeDtypeStruct((N, C_out, L_out), jnp.float32),
            compiler_params=make_params(
                # Resident output + global stats => batch axis must be sequential.
                dimension_semantics=("arbitrary",)),
        )(x, w_mat, gamma2, beta2)

    # ---- Two-pass fallback for large N*L_out -------------------------------
    kernel1 = functools.partial(_conv_partial_stats_kernel, K=K, padding=padding)
    y, psum, psumsq = pl.pallas_call(
        kernel1,
        grid=(n_blocks,),
        in_specs=[
            pl.BlockSpec((B_TILE, C_in, L), lambda n: (n, 0, 0)),
            pl.BlockSpec((C_out, K * C_in), lambda n: (0, 0)),
        ],
        out_specs=(
            pl.BlockSpec((B_TILE, C_out, L_out), lambda n: (n, 0, 0)),
            pl.BlockSpec((1, C_out, 1), lambda n: (n, 0, 0)),
            pl.BlockSpec((1, C_out, 1), lambda n: (n, 0, 0)),
        ),
        out_shape=(
            jax.ShapeDtypeStruct((N, C_out, L_out), jnp.float32),
            jax.ShapeDtypeStruct((n_blocks, C_out, 1), jnp.float32),
            jax.ShapeDtypeStruct((n_blocks, C_out, 1), jnp.float32),
        ),
        compiler_params=make_params(
            dimension_semantics=("parallel",)),   # per-block stats -> megacore-safe
    )(x, w_mat)

    # Tiny per-channel epilogue prep in XLA.
    # TODO(synk): E[x^2]-E[x]^2 loses f32 precision for |mean| >> std; the fused
    # path already uses mean-subtracted variance, the fallback keeps the guard.
    m = float(N * L_out)
    mean = jnp.sum(psum[:, :, 0], axis=0) / m
    var = jnp.maximum(jnp.sum(psumsq[:, :, 0], axis=0) / m - mean * mean, 0.0)
    inv_vec = gamma * lax.rsqrt(var + _EPS)
    shift_vec = beta - mean * inv_vec
    inv2 = inv_vec.reshape(C_out, 1).astype(jnp.float32)
    shift2 = shift_vec.reshape(C_out, 1).astype(jnp.float32)

    tile_l = _pick_l_tile(L_out, C_out, B_TILE, vmem_limit // 4)
    out = pl.pallas_call(
        _bn_relu_kernel,
        grid=(n_blocks, L_out // tile_l),
        in_specs=[
            pl.BlockSpec((B_TILE, C_out, tile_l), lambda n, l: (n, 0, l)),
            pl.BlockSpec((C_out, 1), lambda n, l: (0, 0)),
            pl.BlockSpec((C_out, 1), lambda n, l: (0, 0)),
        ],
        out_specs=pl.BlockSpec((B_TILE, C_out, tile_l), lambda n, l: (n, 0, l)),
        out_shape=jax.ShapeDtypeStruct((N, C_out, L_out), jnp.float32),
        compiler_params=make_params(
            dimension_semantics=("parallel", "parallel")),
    )(y, inv2, shift2)
    return out


def _reference(x, weight, gamma, beta, *, stride, padding, eps=_EPS):
    """Pure-JAX reference: conv1d (no bias) + BatchNorm1d(train) + ReLU.
    Inputs are pre-rounded to bf16 to match the kernel's MXU operand precision."""
    xb = x.astype(jnp.bfloat16).astype(jnp.float32)
    wb = weight.astype(jnp.bfloat16).astype(jnp.float32)
    y = lax.conv_general_dilated(
        xb, wb, window_strides=(stride,), padding=[(padding, padding)],
        dimension_numbers=("NCH", "OIH", "NCH"))
    mean = jnp.mean(y, axis=(0, 2), keepdims=True)
    var = jnp.mean((y - mean) ** 2, axis=(0, 2), keepdims=True)
    y = (y - mean) * lax.rsqrt(var + eps)
    y = y * gamma.reshape(1, -1, 1) + beta.reshape(1, -1, 1)
    return jnp.maximum(y, 0.0)


if __name__ == "__main__":
    # Small shapes consistent with the module's forward: NCL input.
    N, C_in, L = 2, 4, 16
    C_out, K, stride, padding = 8, 3, 1, 1

    key = jax.random.PRNGKey(0)
    kx, kw, kg, kb = jax.random.split(key, 4)
    x = jax.random.normal(kx, (N, C_in, L), dtype=jnp.float32)
    weight = jax.random.normal(kw, (C_out, C_in, K), dtype=jnp.float32) * 0.1
    # Module init is gamma=1, beta=0; use perturbed values to exercise the affine path.
    gamma = 1.0 + 0.1 * jax.random.normal(kg, (C_out,), dtype=jnp.float32)
    beta = 0.1 * jax.random.normal(kb, (C_out,), dtype=jnp.float32)

    ref = _reference(x, weight, gamma, beta, stride=stride, padding=padding)

    # Fused single-pass path (taken automatically at this size).
    out_fused = jax.block_until_ready(
        conv1d_bn_relu(x, weight, gamma, beta, stride=stride, padding=padding))
    # Two-pass fallback path (exercised explicitly for coverage).
    out_two_pass = jax.block_until_ready(
        conv1d_bn_relu(x, weight, gamma, beta, stride=stride, padding=padding,
                       force_two_pass=True))

    assert out_fused.shape == (N, C_out, L)
    assert out_two_pass.shape == (N, C_out, L)
    assert jnp.allclose(out_fused, ref, atol=1e-4, rtol=1e-4), "fused path mismatch"
    assert jnp.allclose(out_two_pass, ref, atol=1e-4, rtol=1e-4), "two-pass path mismatch"

    print("KERNEL_OK")
</pallas_src>

<mosaic_0001>
module attributes {stable_mosaic.version = 11 : i64} {
  func.func @_conv_bn_relu_fused_kernel(%arg0: i32, %arg1: memref<2x4x16xf32, #tpu.memory_space<vmem>>, %arg2: memref<8x12xbf16, #tpu.memory_space<vmem>>, %arg3: memref<8x1xf32, #tpu.memory_space<vmem>>, %arg4: memref<8x1xf32, #tpu.memory_space<vmem>>, %arg5: memref<2x8x16xf32, #tpu.memory_space<vmem>>) attributes {dimension_semantics = [#tpu.dimension_semantics<arbitrary>], iteration_bounds = array<i64: 1>, scalar_prefetch = 0 : i64, scratch_operands = 0 : i64, tpu.core_type = #tpu.core_type<tc>, window_params = [{transform_indices = @transform_0, window_bounds = array<i64: 2, 4, 16>}, {pipeline_mode = #tpu.pipeline_mode<synchronous>, transform_indices = @transform_1, window_bounds = array<i64: 8, 12>}, {pipeline_mode = #tpu.pipeline_mode<synchronous>, transform_indices = @transform_2, window_bounds = array<i64: 8, 1>}, {pipeline_mode = #tpu.pipeline_mode<synchronous>, transform_indices = @transform_3, window_bounds = array<i64: 8, 1>}, {pipeline_mode = #tpu.pipeline_mode<synchronous>, transform_indices = @transform_4, window_bounds = array<i64: 2, 8, 16>}]} {
    %c2_i32 = arith.constant 2 : i32
    %0 = arith.muli %arg0, %c2_i32 : i32
    %c0 = arith.constant 0 : index
    %c0_0 = arith.constant 0 : index
    %c0_1 = arith.constant 0 : index
    %1 = vector.load %arg1[%c0, %c0_0, %c0_1] : memref<2x4x16xf32, #tpu.memory_space<vmem>>, vector<2x4x16xf32>
    %2 = arith.truncf %1 : vector<2x4x16xf32> to vector<2x4x16xbf16>
    %cst = arith.constant 0.000000e+00 : bf16
    %3 = vector.broadcast %cst : bf16 to vector<2x4x1xbf16>
    %4 = tpu.concatenate %3, %2, %3 in 2 : vector<2x4x1xbf16>, vector<2x4x16xbf16>, vector<2x4x1xbf16> -> vector<2x4x18xbf16>
    %c0_2 = arith.constant 0 : index
    %c0_3 = arith.constant 0 : index
    %5 = vector.load %arg2[%c0_2, %c0_3] : memref<8x12xbf16, #tpu.memory_space<vmem>>, vector<8x12xbf16>
    %6 = vector.extract_strided_slice %4 {offsets = [0, 0, 0], sizes = [1, 4, 16], strides = [1, 1, 1]} : vector<2x4x18xbf16> to vector<1x4x16xbf16>
    %7 = vector.shape_cast %6 : vector<1x4x16xbf16> to vector<4x16xbf16>
    %8 = vector.extract_strided_slice %4 {offsets = [0, 0, 1], sizes = [1, 4, 16], strides = [1, 1, 1]} : vector<2x4x18xbf16> to vector<1x4x16xbf16>
    %9 = vector.shape_cast %8 : vector<1x4x16xbf16> to vector<4x16xbf16>
    %10 = vector.extract_strided_slice %4 {offsets = [0, 0, 2], sizes = [1, 4, 16], strides = [1, 1, 1]} : vector<2x4x18xbf16> to vector<1x4x16xbf16>
    %11 = vector.shape_cast %10 : vector<1x4x16xbf16> to vector<4x16xbf16>
    %12 = tpu.concatenate %7, %9, %11 in 0 : vector<4x16xbf16>, vector<4x16xbf16>, vector<4x16xbf16> -> vector<12x16xbf16>
    %cst_4 = arith.constant dense<0.000000e+00> : vector<8x16xf32>
    %13 = tpu.matmul %5, %12, %cst_4 {dimension_numbers = #tpu.dot_dimension_numbers<[1], [0], [0], [1], [0, 0, 1, 1], [], []>} : vector<8x12xbf16>, vector<12x16xbf16>, vector<8x16xf32> -> vector<8x16xf32>
    %c0_i32 = arith.constant 0 : i32
    %14 = arith.addi %0, %c0_i32 : i32
    %15 = arith.index_cast %14 : i32 to index
    %c0_5 = arith.constant 0 : index
    %c0_6 = arith.constant 0 : index
    %16 = vector.load %arg5[%15, %c0_5, %c0_6] : memref<2x8x16xf32, #tpu.memory_space<vmem>>, vector<1x8x16xf32>
    %17 = vector.shape_cast %16 : vector<1x8x16xf32> to vector<8x16xf32>
    %18 = vector.shape_cast %13 : vector<8x16xf32> to vector<1x8x16xf32>
    tpu.vector_store %arg5[%15, %c0_5, %c0_6], %18 {strides = array<i32>} : memref<2x8x16xf32, #tpu.memory_space<vmem>>, vector<1x8x16xf32>,
    %19 = vector.extract_strided_slice %4 {offsets = [1, 0, 0], sizes = [1, 4, 16], strides = [1, 1, 1]} : vector<2x4x18xbf16> to vector<1x4x16xbf16>
    %20 = vector.shape_cast %19 : vector<1x4x16xbf16> to vector<4x16xbf16>
    %21 = vector.extract_strided_slice %4 {offsets = [1, 0, 1], sizes = [1, 4, 16], strides = [1, 1, 1]} : vector<2x4x18xbf16> to vector<1x4x16xbf16>
    %22 = vector.shape_cast %21 : vector<1x4x16xbf16> to vector<4x16xbf16>
    %23 = vector.extract_strided_slice %4 {offsets = [1, 0, 2], sizes = [1, 4, 16], strides = [1, 1, 1]} : vector<2x4x18xbf16> to vector<1x4x16xbf16>
    %24 = vector.shape_cast %23 : vector<1x4x16xbf16> to vector<4x16xbf16>
    %25 = tpu.concatenate %20, %22, %24 in 0 : vector<4x16xbf16>, vector<4x16xbf16>, vector<4x16xbf16> -> vector<12x16xbf16>
    %cst_7 = arith.constant dense<0.000000e+00> : vector<8x16xf32>
    %26 = tpu.matmul %5, %25, %cst_7 {dimension_numbers = #tpu.dot_dimension_numbers<[1], [0], [0], [1], [0, 0, 1, 1], [], []>} : vector<8x12xbf16>, vector<12x16xbf16>, vector<8x16xf32> -> vector<8x16xf32>
    %c1_i32 = arith.constant 1 : i32
    %27 = arith.addi %0, %c1_i32 : i32
    %28 = arith.index_cast %27 : i32 to index
    %c0_8 = arith.constant 0 : index
    %c0_9 = arith.constant 0 : index
    %29 = vector.load %arg5[%28, %c0_8, %c0_9] : memref<2x8x16xf32, #tpu.memory_space<vmem>>, vector<1x8x16xf32>
    %30 = vector.shape_cast %29 : vector<1x8x16xf32> to vector<8x16xf32>
    %31 = vector.shape_cast %26 : vector<8x16xf32> to vector<1x8x16xf32>
    tpu.vector_store %arg5[%28, %c0_8, %c0_9], %31 {strides = array<i32>} : memref<2x8x16xf32, #tpu.memory_space<vmem>>, vector<1x8x16xf32>,
    %c0_i32_10 = arith.constant 0 : i32
    %32 = arith.cmpi eq, %arg0, %c0_i32_10 : i32
    %33 = arith.extui %32 : i1 to i32
    %c0_i32_11 = arith.constant 0 : i32
    %34 = arith.cmpi ne, %33, %c0_i32_11 : i32
    scf.if %34 {
      %cst_12 = arith.constant 0.000000e+00 : f32
      %35 = vector.broadcast %cst_12 : f32 to vector<8x1xf32>
      %c0_i32_13 = arith.constant 0 : i32
      %c2_i32_14 = arith.constant 2 : i32
      %36 = arith.addi %c0_i32_13, %c2_i32_14 : i32
      %c1_i32_15 = arith.constant 1 : i32
      %37 = scf.for %arg6 = %c0_i32_13 to %36 step %c1_i32_15 iter_args(%arg7 = %35) -> (vector<8x1xf32>)  : i32 {
        %53 = arith.index_cast %arg6 : i32 to index
        %c0_32 = arith.constant 0 : index
        %c0_33 = arith.constant 0 : index
        %54 = vector.load %arg5[%53, %c0_32, %c0_33] : memref<2x8x16xf32, #tpu.memory_space<vmem>>, vector<1x8x16xf32>
        %55 = vector.shape_cast %54 : vector<1x8x16xf32> to vector<8x16xf32>
        %cst_34 = arith.constant dense<0.000000e+00> : vector<8xf32>
        %56 = vector.multi_reduction <add>, %55, %cst_34 [1] : vector<8x16xf32> to vector<8xf32>
        %57 = vector.shape_cast %56 : vector<8xf32> to vector<8x1xf32>
        %58 = arith.addf %arg7, %57 : vector<8x1xf32>
        scf.yield %58 : vector<8x1xf32>
      }
      %c2_i32_16 = arith.constant 2 : i32
      %cst_17 = arith.constant 3.125000e-02 : f32
      %38 = vector.broadcast %cst_17 : f32 to vector<8x1xf32>
      %39 = arith.mulf %37, %38 : vector<8x1xf32>
      %c0_i32_18 = arith.constant 0 : i32
      %c2_i32_19 = arith.constant 2 : i32
      %40 = arith.addi %c0_i32_18, %c2_i32_19 : i32
      %c1_i32_20 = arith.constant 1 : i32
      %41 = scf.for %arg6 = %c0_i32_18 to %40 step %c1_i32_20 iter_args(%arg7 = %35) -> (vector<8x1xf32>)  : i32 {
        %53 = arith.index_cast %arg6 : i32 to index
        %c0_32 = arith.constant 0 : index
        %c0_33 = arith.constant 0 : index
        %54 = vector.load %arg5[%53, %c0_32, %c0_33] : memref<2x8x16xf32, #tpu.memory_space<vmem>>, vector<1x8x16xf32>
        %55 = vector.shape_cast %54 : vector<1x8x16xf32> to vector<8x16xf32>
        %56 = vector.broadcast %39 : vector<8x1xf32> to vector<8x16xf32>
        %57 = arith.subf %55, %56 : vector<8x16xf32>
        %58 = arith.mulf %57, %57 : vector<8x16xf32>
        %cst_34 = arith.constant dense<0.000000e+00> : vector<8xf32>
        %59 = vector.multi_reduction <add>, %58, %cst_34 [1] : vector<8x16xf32> to vector<8xf32>
        %60 = vector.shape_cast %59 : vector<8xf32> to vector<8x1xf32>
        %61 = arith.addf %arg7, %60 : vector<8x1xf32>
        scf.yield %61 : vector<8x1xf32>
      }
      %c2_i32_21 = arith.constant 2 : i32
      %cst_22 = arith.constant 3.125000e-02 : f32
      %42 = vector.broadcast %cst_22 : f32 to vector<8x1xf32>
      %43 = arith.mulf %41, %42 : vector<8x1xf32>
      %c0_23 = arith.constant 0 : index
      %c0_24 = arith.constant 0 : index
      %44 = vector.load %arg3[%c0_23, %c0_24] : memref<8x1xf32, #tpu.memory_space<vmem>>, vector<8x1xf32>
      %cst_25 = arith.constant 1.000000e-03 : f32
      %45 = vector.broadcast %cst_25 : f32 to vector<8x1xf32>
      %46 = arith.addf %43, %45 : vector<8x1xf32>
      %47 = math.rsqrt %46 : vector<8x1xf32>
      %48 = arith.mulf %44, %47 : vector<8x1xf32>
      %c0_26 = arith.constant 0 : index
      %c0_27 = arith.constant 0 : index
      %49 = vector.load %arg4[%c0_26, %c0_27] : memref<8x1xf32, #tpu.memory_space<vmem>>, vector<8x1xf32>
      %50 = arith.mulf %39, %48 : vector<8x1xf32>
      %51 = arith.subf %49, %50 : vector<8x1xf32>
      %c0_i32_28 = arith.constant 0 : i32
      %c2_i32_29 = arith.constant 2 : i32
      %52 = arith.addi %c0_i32_28, %c2_i32_29 : i32
      %c1_i32_30 = arith.constant 1 : i32
      scf.for %arg6 = %c0_i32_28 to %52 step %c1_i32_30  : i32 {
        %c1_i32_32 = arith.constant 1 : i32
        %53 = arith.muli %arg6, %c1_i32_32 : i32
        %c0_i32_33 = arith.constant 0 : i32
        %54 = arith.addi %c0_i32_33, %53 : i32
        %55 = arith.index_cast %54 : i32 to index
        %c0_34 = arith.constant 0 : index
        %c0_35 = arith.constant 0 : index
        %56 = vector.load %arg5[%55, %c0_34, %c0_35] : memref<2x8x16xf32, #tpu.memory_space<vmem>>, vector<1x8x16xf32>
        %57 = vector.shape_cast %56 : vector<1x8x16xf32> to vector<8x16xf32>
        %58 = vector.broadcast %48 : vector<8x1xf32> to vector<8x16xf32>
        %59 = arith.mulf %57, %58 : vector<8x16xf32>
        %60 = vector.broadcast %51 : vector<8x1xf32> to vector<8x16xf32>
        %61 = arith.addf %59, %60 : vector<8x16xf32>
        %cst_36 = arith.constant 0.000000e+00 : f32
        %62 = vector.broadcast %cst_36 : f32 to vector<8x16xf32>
        %63 = arith.maximumf %61, %62 : vector<8x16xf32>
        %64 = arith.index_cast %54 : i32 to index
        %c0_37 = arith.constant 0 : index
        %c0_38 = arith.constant 0 : index
        %65 = vector.load %arg5[%64, %c0_37, %c0_38] : memref<2x8x16xf32, #tpu.memory_space<vmem>>, vector<1x8x16xf32>
        %66 = vector.shape_cast %65 : vector<1x8x16xf32> to vector<8x16xf32>
        %67 = vector.shape_cast %63 : vector<8x16xf32> to vector<1x8x16xf32>
        tpu.vector_store %arg5[%64, %c0_37, %c0_38], %67 {strides = array<i32>} : memref<2x8x16xf32, #tpu.memory_space<vmem>>, vector<1x8x16xf32>,
      }
      %c2_i32_31 = arith.constant 2 : i32
    } else {
    }
    return
  }
  func.func @transform_0(%arg0: i32) -> (i32, i32, i32) {
    %c0_i32 = arith.constant 0 : i32
    %c0_i32_0 = arith.constant 0 : i32
    %c0_i32_1 = arith.constant 0 : i32
    return %arg0, %c0_i32, %c0_i32_0 : i32, i32, i32
  }
  func.func @transform_1(%arg0: i32) -> (i32, i32) {
    %c0_i32 = arith.constant 0 : i32
    %c0_i32_0 = arith.constant 0 : i32
    %c0_i32_1 = arith.constant 0 : i32
    return %c0_i32, %c0_i32_0 : i32, i32
  }
  func.func @transform_2(%arg0: i32) -> (i32, i32) {
    %c0_i32 = arith.constant 0 : i32
    %c0_i32_0 = arith.constant 0 : i32
    %c0_i32_1 = arith.constant 0 : i32
    return %c0_i32, %c0_i32_0 : i32, i32
  }
  func.func @transform_3(%arg0: i32) -> (i32, i32) {
    %c0_i32 = arith.constant 0 : i32
    %c0_i32_0 = arith.constant 0 : i32
    %c0_i32_1 = arith.constant 0 : i32
    return %c0_i32, %c0_i32_0 : i32, i32
  }
  func.func @transform_4(%arg0: i32) -> (i32, i32, i32) {
    %c0_i32 = arith.constant 0 : i32
    %c0_i32_0 = arith.constant 0 : i32
    %c0_i32_1 = arith.constant 0 : i32
    %c0_i32_2 = arith.constant 0 : i32
    return %c0_i32, %c0_i32_0, %c0_i32_1 : i32, i32, i32
  }
}

</mosaic_0001>

<bundles_post_ra>
// kernel: conv1d_bn_relu.1
= control target key start
LH: loop header
LB: loop body
LE: loop exit
PB: predicated region body
PF: predicated region fallthrough
CT: control target
= control target key end

     0   :  { %s408_s0 = inlined_call_operand.vmem [shape: f32[2,4,16], index: 0, kind: input, shape index: {}]   ;;  %s409_s1 = inlined_call_operand.vmem [shape: bf16[8,12], index: 1, kind: input, shape index: {}]   ;;  %s410_s2 = inlined_call_operand.vmem [shape: f32[8,1], index: 2, kind: input, shape index: {}]   ;;  %s411_s3 = inlined_call_operand.vmem [shape: f32[8,1], index: 3, kind: input, shape index: {}]   ;;  %s412_s4 = inlined_call_operand.hbm [shape: f32[2,8,16], index: 4, kind: output, shape index: {}]  }
   0x1   :  { %v20_v0 = vld [vmem:[%s408_s0] sm:$0xf]  ;;  %v21_v1 = vld [vmem:[%s408_s0 + $0x4] sm:$0xf] }
   0x2   :  { %v22_v2 = vpack.c.bf16 %v20_v0, %v20_v0 }
   0x3   :  { %9 = vsyncpa [#allocation3], 0  ;;  %v23_v4 = vpack.c.bf16 %v21_v1, %v21_v1  ;;  %s353_s19 = smov 1   ;;  %vm34_vm0 = vcmask 7168   ;;  %vm40_vm1 = vcmask 138240   ;;  %s354_s20 = smov 126  }
   0x4   :  { %v26_v3 = vunpack.c.l.b16 %v22_v2  ;;  %s355_s0 = smov 127   ;;  %vm51_vm2 = vcmask 1041408   ;;  %vm54_vm3 = vcmask 1043456   ;;  %vm61_vm4 = vcmask 1045504   ;;  %v43_v23 = vld [vmem:[%s409_s1] sm:$0xf] }
   0x5   :  { %v27_v6 = vunpack.c.l.b16 %v23_v4  ;;  %vm57_vm5 = vcmask 97280   ;;  %vm79_vm6 = vcmask 130048   ;;  %v333_v33 = vmov 0.0   ;;  %s337_s1 = smov 0  }
   0x6   :  { %v28_v5 = vpack.c.b16 %v26_v3, %v26_v3 }
   0x7   :  { %v29_v7 = vpack.c.b16 %v27_v6, %v27_v6 }
   0x8   :  { %30 = vrot.lane.b32.xlu0 %v28_v5, %s353_s19 }
  0x10   :  { %32 = vrot.lane.b32.xlu0 %v29_v7, %s353_s19 }
  0x7a   :  { %v31_v8 = vpop.permute.xlu0 %30 }
  0x7b   :  { %v37_v9 = vsel %vm34_vm0, 0, %v31_v8 }
  0x7c   :  { %v41_v10 = vsel %vm40_vm1, %v37_v9, 0 }
  0x7d   :  { %v48_v11 = vrot.slane %v41_v10, 4  ;;  %v45_v12 = vrot.slane %v41_v10, 6 }
  0x7f   :  { %49 = vrot.lane.b32.xlu2 %v48_v11, %s354_s20  ;;  %46 = vrot.lane.b32.xlu1 %v45_v12, %s355_s0 }
  0x82   :  { %v33_v13 = vpop.permute.xlu0 %32 }
  0x83   :  { %v39_v14 = vsel %vm34_vm0, 0, %v33_v13 }
  0x84   :  { %v42_v15 = vsel %vm40_vm1, %v39_v14, 0 }
  0x85   :  { %v82_v16 = vrot.slane %v42_v15, 6  ;;  %v85_v17 = vrot.slane %v42_v15, 4 }
  0x87   :  { %86 = vrot.lane.b32.xlu2 %v85_v17, %s354_s20  ;;  %83 = vrot.lane.b32.xlu1 %v82_v16, %s355_s0 }
  0xd9   :  { %v50_v18 = vpop.permute.xlu2 %49 }
  0xe1   :  { %v87_v25 = vpop.permute.xlu2 %86 }
  0xf1   :  { %v47_v19 = vpop.permute.xlu1 %46 }
  0xf2   :  { %v53_v20 = vsel %vm51_vm2, %v41_v10, %v47_v19 }
  0xf3   :  { %v56_v21 = vsel %vm54_vm3, %v53_v20, %v50_v18 }
  0xf4   :  { %v62_v22 = vsel %vm61_vm4, %v56_v21, 0 }
  0xf5   :  { %71 = vmatpush.bf16.msra.mxu0 %v62_v22 }
  0xf8   :  { %232 = vmatmul.msk.bf16.vlgmr.msra.gmra.mxu0 %vm57_vm5, %v43_v23 }
  0xf9   :  { %v84_v24 = vpop.permute.xlu1 %83 }
  0xfa   :  { %v89_v26 = vsel %vm51_vm2, %v42_v15, %v84_v24 }
  0xfb   :  { %v91_v27 = vsel %vm54_vm3, %v89_v26, %v87_v25 }
  0xfc   :  { %v92_v28 = vsel %vm61_vm4, %v91_v27, 0 }
  0xfd   :  { %101 = vmatpush.bf16.msra.mxu1 %v92_v28 }
 0x100   :  { %233 = vmatmul.msk.bf16.vlgmr.msra.gmra.mxu1 %vm57_vm5, %v43_v23 }
 0x175   :  { %v73_v29 = vpop.f32.mrf.mxu0 }
 0x176   :  { %80 = vst.msk [vmem:[#allocation2] sm:$0xff] %vm79_vm6, %v73_v29 }
 0x17d   :  { %v75_v30 = vpop.f32.mrf.mxu0  ;;  %v103_v31 = vpop.f32.mrf.mxu1 }
 0x17e   :  { %110 = vst.msk [vmem:[#allocation2 + $0x8] sm:$0xff] %vm79_vm6, %v103_v31 }
 0x185   :  { %v105_v32 = vpop.f32.mrf.mxu1 }
 0x186 LB: > { %s234_s23 = sshll.u32 %s339_s1, 3  ;;  %s120_s1 = sadd.s32 1, %s339_s1   ;;  %s339_s1 = sphi %s337_s1, %s120_s1   ;;  %v335_v33 = vphi %v333_v33, %v334_v33  }
 0x187   : > { %s123_s24 = scalar_lea.vmem [#allocation2], %s234_s23  ;;  %p117_p0 = scmp.ge.s32.totalorder %s120_s1, 2  }
 0x188   : > { %v124_v34 = vld [vmem:[%s123_s24] sm:$0xff]  ;;  %v341_v39 = vmov (%p117_p0), 0.0   ;;  %s345_s25 = smov (%p117_p0), 0  }
 0x189   : > { %v125_v35 = vsel %vm79_vm6, %v124_v34, 0.0 }
 0x18a   : > { %126 = vadd.xlane.f32.xlu0 %v125_v35 }
 0x1fc   :  { %119 = sbr.rel (!%p117_p0) target bundleno = 390 (0x186), region = 66 }
 0x1fd   : > { %v127_v36 = vpop.xlane.xlu0 %126 }
 0x1fe   : > { %v128_v37 = vadd.f32 %v335_v33, %v127_v36  }
 0x200   : > { %v334_v33 = vmov %v128_v37   ;;  %v129_v38 = vmul.f32 (%p117_p0), 0.03125, %v128_v37 }
 0x201 LB: > { %s235_s26 = sshll.u32 %s347_s25, 3  ;;  %s135_s25 = sadd.s32 1, %s347_s25   ;;  %s347_s25 = sphi %s345_s25, %s135_s25   ;;  %v343_v39 = vphi %v341_v39, %v342_v39  }
 0x202   : > { %s138_s27 = scalar_lea.vmem [#allocation2], %s235_s26  ;;  %p132_p1 = scmp.ge.s32.totalorder %s135_s25, 2  }
 0x203   : > { %v139_v40 = vld [vmem:[%s138_s27] sm:$0xff]  ;;  %s349_s6 = smov (%p132_p1), 0  }
 0x204   : > { %v140_v41 = vsub.f32 %v139_v40, %v129_v38  ;;  %v147_v53 = vld [vmem:[%s410_s2] sm:$0xff] (%p132_p1) }
 0x205   :  { %v160_v57 = vld [vmem:[%s411_s3] sm:$0xff] (%p132_p1) }
 0x206   : > { %v141_v42 = vmul.f32 %v140_v41, %v140_v41 }
 0x208   : > { %v142_v43 = vsel %vm79_vm6, %v141_v42, 0.0 }
 0x209   : > { %143 = vadd.xlane.f32.xlu0 %v142_v43 }
 0x27b   :  { %134 = sbr.rel (!%p132_p1) target bundleno = 513 (0x201), region = 77 }
 0x27c   : > { %v144_v44 = vpop.xlane.xlu0 %143 }
 0x27d   : > { %v145_v45 = vadd.f32 %v343_v39, %v144_v44  }
 0x27f   : > { %v342_v39 = vmov %v145_v45   ;;  %v146_v46 = vmul.f32 (%p132_p1), 0.03125, %v145_v45 }
 0x281   :  { %v148_v47 = vadd.f32 0.001, %v146_v46 }
 0x283   :  { %284 = vrsqrt.f32 %v148_v47  ;;  %vm155_vm7 = vweird.f32 %v148_v47 }
 0x289   :  { %v285_v48 = vpop.eup %284 }
 0x28a   :  { %v150_v49 = vmul.f32 %v285_v48, %v148_v47  ;;  %vm156_vm8 = vweird.f32 %v285_v48 }
 0x28b   :  { %vm157_vm9 = vmor %vm155_vm7, %vm156_vm8 }
 0x28c   :  { %v151_v50 = vmul.f32 %v285_v48, %v150_v49 }
 0x28e   :  { %v152_v51 = vmul.f32 0.5, %v151_v50 }
 0x290   :  { %v153_v52 = vsub.f32 1.5, %v152_v51 }
 0x292   :  { %v154_v54 = vmul.f32 %v285_v48, %v153_v52 }
 0x294   :  { %v158_v55 = vsel %vm157_vm9, %v285_v48, %v154_v54 }
 0x295   :  { %v159_v56 = vmul.f32 %v158_v55, %v147_v53 }
 0x297   :  { %v161_v58 = vmul.f32 %v159_v56, %v129_v38 }
 0x299   :  { %v162_v59 = vsub.f32 %v160_v57, %v161_v58 }
 0x29a LB: > { %v356_v60 = vmov 0   ;;  %s236_s7 = sshll.u32 %s351_s6, 3  ;;  %s168_s6 = sadd.s32 1, %s351_s6   ;;  %s351_s6 = sphi %s349_s6, %s168_s6  }
 0x29b   : > { %286 = vset.pattern.permute.xlu0 %v356_v60  ;;  %s170_s2 = scalar_lea.vmem [#allocation2], %s236_s7  ;;  %p165_p2 = scmp.ge.s32.totalorder %s168_s6, 2  }
 0x29c   : > { %174 = vperm.xlu0 %286, %v159_v56   ;;  %v171_v62 = vld [vmem:[%s170_s2] sm:$0xff]  ;;  %s192_s9 = sshll.u32 (%p165_p2), %s412_s4, 4  ;;  %s357_s10 = smov (%p165_p2), [#allocation2]   ;;  %s193_s9 = int_to_ptr.hbm [resolvable:$true] %s192_s9 }
 0x29d   :  { %s190_s11 = sshll.u32 (%p165_p2), %s357_s10, 4  ;;  %s358_s12 = smov (%p165_p2), 128   ;;  %s191_s11 = int_to_ptr.vmem [resolvable:$true] %s190_s11 }
 0x29e   :  { %s359_s13 = smov (%p165_p2), 8  }
 0x2a4   : > { %180 = vperm.xlu0 %286, %v162_v59  }
 0x30e   : > { %v175_v61 = vpop.permute.xlu0 %174 }
 0x30f   : > { %v177_v63 = vmul.f32 %v175_v61, %v171_v62 }
 0x316   : > { %v181_v0 = vpop.permute.xlu0 %180 }
 0x317   : > { %v183_v1 = vadd.f32 %v181_v0, %v177_v63  ;;  %167 = sbr.rel (!%p165_p2) target bundleno = 666 (0x29a), region = 88 }
 0x319   : > { %v184_v2 = vmax.f32 %v183_v1, 0.0 }
 0x31b   : > { %185 = vst.msk [vmem:[%s170_s2] sm:$0xff] %vm79_vm6, %v184_v2 }
 0x31c   :  { %198 = dma.vmem_to_hbm [thread:$0]  %s191_s11, 256, %s193_s9, [#allocation3], %s358_s12, %s358_s12, %s359_s13  }
 0x31d   :  { %331 = dma.done.wait [#allocation3], 256  }
 0x31e   :  { %332 = vsyncadd [#allocation3], 4294967040 }
 0x31f   :  { %203 = vsyncpa [#allocation3], 1 }

</bundles_post_ra>
